<compile_context>
chip_gen: v7x
topology: tpu7x:2x2x1
jax: 0.10.0
libtpu: 0.0.40
codegen_flags: <defaults>
</compile_context>

<pallas_src>
import functools

import jax
import jax.numpy as jnp
from jax import lax
from jax.experimental import pallas as pl
from jax.experimental.pallas import tpu as pltpu


# ---------------------------------------------------------------------------
# helpers for static tiling decisions
# ---------------------------------------------------------------------------
def _largest_divisor_at_most(n, cap):
    if n <= cap:
        return n
    for c in range(cap, 0, -1):
        if n % c == 0:
            return c
    return 1


def _batch_block(batch):
    # Split batch into two grid blocks (marked "parallel") when it is large
    # enough to keep each block a multiple of 8 sublanes -> lets v7x's two
    # TensorCores each run an independent slice of the recurrence.
    if batch % 16 == 0:
        return batch // 2
    return batch


# ---------------------------------------------------------------------------
# Pallas kernel: one grid step == one (batch-block, time-chunk).
# h/c carries live in VMEM scratch and persist across the sequential time axis.
# ---------------------------------------------------------------------------
def lstm_kernel(x_ref, wih_ref, whh_ref, bias_ref,
                out_ref, hn_ref, cn_ref,
                xp_scr, h_scr, c_scr):
    t_blk = pl.program_id(1)
    n_t_blk = pl.num_programs(1)

    tc, bb, in_sz = x_ref.shape        # (T_chunk, B_block, I)
    H = h_scr.shape[-1]

    @pl.when(t_blk == 0)
    def _():
        h_scr[...] = jnp.zeros_like(h_scr)
        c_scr[...] = jnp.zeros_like(c_scr)

    # ---- batched input projection for the whole chunk: one MXU op with
    # tc*bb rows (better systolic fill) instead of a tiny matmul per step;
    # bias broadcast is hoisted out of the recurrence too. ----
    x_flat = x_ref[...].reshape(tc * bb, in_sz)
    xp = jnp.dot(x_flat, wih_ref[...], preferred_element_type=jnp.float32)
    xp = xp + bias_ref[...]
    xp_scr[...] = xp.reshape(tc, bb, 4 * H)

    whh = whh_ref[...]                 # (H, 4H), resident in VMEM

    # ---- serial recurrence over the chunk; h/c stay in vregs via the carry.
    # Note: gate slices are 32-lane sub-vreg extracts at H=32; at production
    # sizes pad H to a multiple of 128 so the split is free.
    def step(t, carry):
        h, c = carry
        gates = xp_scr[t] + jnp.dot(h, whh, preferred_element_type=jnp.float32)
        i_g = jax.nn.sigmoid(gates[:, 0 * H:1 * H])
        f_g = jax.nn.sigmoid(gates[:, 1 * H:2 * H])
        g_g = jnp.tanh(gates[:, 2 * H:3 * H])
        o_g = jax.nn.sigmoid(gates[:, 3 * H:4 * H])
        c_new = f_g * c + i_g * g_g
        h_new = o_g * jnp.tanh(c_new)
        out_ref[t] = h_new.astype(out_ref.dtype)   # VMEM store; HBM writeback once/chunk
        return h_new, c_new

    h_last, c_last = lax.fori_loop(
        0, tc, step, (h_scr[...], c_scr[...]),
        unroll=True if tc <= 32 else 8)

    h_scr[...] = h_last
    c_scr[...] = c_last

    # Final states written exactly once (last time chunk), no per-step stores.
    @pl.when(t_blk == n_t_blk - 1)
    def _():
        hn_ref[...] = h_last.astype(hn_ref.dtype)
        cn_ref[...] = c_last.astype(cn_ref.dtype)


# ---------------------------------------------------------------------------
# Wrapper: parameter plumbing + pallas_call.
# ---------------------------------------------------------------------------
@jax.jit
def lstm_forward(x, w_ih, w_hh, b_ih, b_hh):
    """x: (T, B, I) float32 (time-major, nn.LSTM default batch_first=False).
    Returns (output (T,B,H), (h_n (1,B,H), c_n (1,B,H)))."""
    T, B, I = x.shape
    H4 = w_ih.shape[0]
    H = H4 // 4

    t_chunk = _largest_divisor_at_most(T, 128)   # all of T in one chunk at small T
    n_t_blk = T // t_chunk
    b_blk = _batch_block(B)
    n_b_blk = B // b_blk

    wih_t = w_ih.T                              # (I, 4H)
    whh_t = w_hh.T                              # (H, 4H)
    bias_row = (b_ih + b_hh).reshape(1, H4)     # (1, 4H), pre-summed

    out, h_n, c_n = pl.pallas_call(
        lstm_kernel,
        out_shape=(
            jax.ShapeDtypeStruct((T, B, H), x.dtype),
            jax.ShapeDtypeStruct((B, H), x.dtype),
            jax.ShapeDtypeStruct((B, H), x.dtype),
        ),
        grid_spec=pltpu.PrefetchScalarGridSpec(
            num_scalar_prefetch=0,
            grid=(n_b_blk, n_t_blk),
            in_specs=[
                pl.BlockSpec((t_chunk, b_blk, I), lambda bi, ti: (ti, bi, 0)),  # x chunk
                pl.BlockSpec((I, H4), lambda bi, ti: (0, 0)),                   # W_ih^T (resident)
                pl.BlockSpec((H, H4), lambda bi, ti: (0, 0)),                   # W_hh^T (resident)
                pl.BlockSpec((1, H4), lambda bi, ti: (0, 0)),                   # bias (resident)
            ],
            out_specs=[
                pl.BlockSpec((t_chunk, b_blk, H), lambda bi, ti: (ti, bi, 0)),  # hidden sequence
                pl.BlockSpec((b_blk, H), lambda bi, ti: (bi, 0)),               # h_n
                pl.BlockSpec((b_blk, H), lambda bi, ti: (bi, 0)),               # c_n
            ],
            scratch_shapes=[
                pltpu.VMEM((t_chunk, b_blk, H4), jnp.float32),   # precomputed input proj
                pltpu.VMEM((b_blk, H), jnp.float32),             # h carry
                pltpu.VMEM((b_blk, H), jnp.float32),             # c carry
            ],
        ),
        compiler_params=pltpu.CompilerParams(
            # batch axis is independent (megacore-shardable); time is serial.
            dimension_semantics=("parallel", "arbitrary"),
        ),
    )(x, wih_t, whh_t, bias_row)

    return out, (h_n[None], c_n[None])


# ---------------------------------------------------------------------------
# Deterministic parameter init (mirrors LSTM.initialize(): orthogonal weights,
# forget-gate bias slice [H:2H] filled with forget_bias = 0.0).
# ---------------------------------------------------------------------------
def orthogonal_init(key, shape, dtype=jnp.float32):
    rows, cols = shape
    a = jax.random.normal(key, (max(rows, cols), min(rows, cols)), dtype=jnp.float32)
    q, r = jnp.linalg.qr(a)
    q = q * jnp.sign(jnp.diagonal(r))[None, :]
    if rows < cols:
        q = q.T
    return q[:rows, :cols].astype(dtype)


def make_params(key, input_size, hidden_size, forget_bias=0.0):
    k1, k2, k3, k4 = jax.random.split(key, 4)
    H = hidden_size
    w_ih = orthogonal_init(k1, (4 * H, input_size))
    w_hh = orthogonal_init(k2, (4 * H, H))
    bound = 1.0 / jnp.sqrt(H)
    b_ih = jax.random.uniform(k3, (4 * H,), minval=-bound, maxval=bound)
    b_hh = jax.random.uniform(k4, (4 * H,), minval=-bound, maxval=bound)
    # LSTM.initialize(): bias[H:2H] = forget_bias (on both bias_ih and bias_hh)
    b_ih = b_ih.at[H:2 * H].set(forget_bias)
    b_hh = b_hh.at[H:2 * H].set(forget_bias)
    return w_ih, w_hh, b_ih, b_hh


# ---------------------------------------------------------------------------
# Pure-JAX reference (lax.scan) for correctness checking.
# ---------------------------------------------------------------------------
def lstm_reference(x, w_ih, w_hh, b_ih, b_hh):
    T, B, I = x.shape
    H = w_hh.shape[1]

    def step(carry, x_t):
        h, c = carry
        gates = x_t @ w_ih.T + h @ w_hh.T + b_ih + b_hh
        i = jax.nn.sigmoid(gates[:, 0 * H:1 * H])
        f = jax.nn.sigmoid(gates[:, 1 * H:2 * H])
        g = jnp.tanh(gates[:, 2 * H:3 * H])
        o = jax.nn.sigmoid(gates[:, 3 * H:4 * H])
        c = f * c + i * g
        h = o * jnp.tanh(c)
        return (h, c), h

    init = (jnp.zeros((B, H), jnp.float32), jnp.zeros((B, H), jnp.float32))
    (h_n, c_n), out = lax.scan(step, init, x)
    return out, (h_n[None], c_n[None])


if __name__ == "__main__":
    # Small shapes: BaseRNN(input_size=16, hidden_size=32, n_layers=1, 'ylstm')
    T, B, INPUT, HIDDEN = 8, 8, 16, 32

    key = jax.random.PRNGKey(0)
    kx, kp = jax.random.split(key)
    x = jax.random.normal(kx, (T, B, INPUT), dtype=jnp.float32)  # layout: (T, B, I)
    w_ih, w_hh, b_ih, b_hh = make_params(kp, INPUT, HIDDEN, forget_bias=0.0)

    out, (h_n, c_n) = lstm_forward(x, w_ih, w_hh, b_ih, b_hh)
    jax.block_until_ready((out, h_n, c_n))

    out_ref, (h_ref, c_ref) = lstm_reference(x, w_ih, w_hh, b_ih, b_hh)
    assert out.shape == (T, B, HIDDEN)
    assert h_n.shape == (1, B, HIDDEN) and c_n.shape == (1, B, HIDDEN)
    assert jnp.allclose(out, out_ref, atol=1e-5, rtol=1e-5)
    assert jnp.allclose(h_n, h_ref, atol=1e-5, rtol=1e-5)
    assert jnp.allclose(c_n, c_ref, atol=1e-5, rtol=1e-5)

    # TODO(synk): BaseRNN.forward() is abstract (NotImplementedError); only the
    # concrete LSTM cell recurrence it configures is implemented here.
    print("KERNEL_OK")
</pallas_src>

<mosaic_0001>
module attributes {stable_mosaic.version = 11 : i64} {
  func.func @lstm_kernel(%arg0: i32, %arg1: i32, %arg2: memref<8x8x16xf32, #tpu.memory_space<vmem>>, %arg3: memref<16x128xf32, #tpu.memory_space<vmem>>, %arg4: memref<32x128xf32, #tpu.memory_space<vmem>>, %arg5: memref<1x128xf32, #tpu.memory_space<vmem>>, %arg6: memref<8x8x32xf32, #tpu.memory_space<vmem>>, %arg7: memref<8x32xf32, #tpu.memory_space<vmem>>, %arg8: memref<8x32xf32, #tpu.memory_space<vmem>>, %arg9: memref<8x8x128xf32, #tpu.memory_space<vmem>>, %arg10: memref<8x32xf32, #tpu.memory_space<vmem>>, %arg11: memref<8x32xf32, #tpu.memory_space<vmem>>) attributes {dimension_semantics = [#tpu.dimension_semantics<parallel>, #tpu.dimension_semantics<arbitrary>], iteration_bounds = array<i64: 1, 1>, scalar_prefetch = 0 : i64, scratch_operands = 3 : i64, tpu.core_type = #tpu.core_type<tc>, window_params = [{transform_indices = @transform_0, window_bounds = array<i64: 8, 8, 16>}, {pipeline_mode = #tpu.pipeline_mode<synchronous>, transform_indices = @transform_1, window_bounds = array<i64: 16, 128>}, {pipeline_mode = #tpu.pipeline_mode<synchronous>, transform_indices = @transform_2, window_bounds = array<i64: 32, 128>}, {pipeline_mode = #tpu.pipeline_mode<synchronous>, transform_indices = @transform_3, window_bounds = array<i64: 1, 128>}, {transform_indices = @transform_4, window_bounds = array<i64: 8, 8, 32>}, {transform_indices = @transform_5, window_bounds = array<i64: 8, 32>}, {transform_indices = @transform_6, window_bounds = array<i64: 8, 32>}]} {
    %c0_i32 = arith.constant 0 : i32
    %0 = arith.cmpi eq, %arg1, %c0_i32 : i32
    %1 = arith.extui %0 : i1 to i32
    %c0_i32_0 = arith.constant 0 : i32
    %2 = arith.cmpi ne, %1, %c0_i32_0 : i32
    scf.if %2 {
      %cst_87 = arith.constant 0.000000e+00 : f32
      %292 = vector.broadcast %cst_87 : f32 to vector<8x32xf32>
      %c0_88 = arith.constant 0 : index
      %c0_89 = arith.constant 0 : index
      %293 = vector.load %arg10[%c0_88, %c0_89] : memref<8x32xf32, #tpu.memory_space<vmem>>, vector<8x32xf32>
      tpu.vector_store %arg10[%c0_88, %c0_89], %292 {strides = array<i32>} : memref<8x32xf32, #tpu.memory_space<vmem>>, vector<8x32xf32>,
      %cst_90 = arith.constant 0.000000e+00 : f32
      %294 = vector.broadcast %cst_90 : f32 to vector<8x32xf32>
      %c0_91 = arith.constant 0 : index
      %c0_92 = arith.constant 0 : index
      %295 = vector.load %arg11[%c0_91, %c0_92] : memref<8x32xf32, #tpu.memory_space<vmem>>, vector<8x32xf32>
      tpu.vector_store %arg11[%c0_91, %c0_92], %294 {strides = array<i32>} : memref<8x32xf32, #tpu.memory_space<vmem>>, vector<8x32xf32>,
    } else {
    }
    %c0 = arith.constant 0 : index
    %c0_1 = arith.constant 0 : index
    %c0_2 = arith.constant 0 : index
    %3 = vector.load %arg2[%c0, %c0_1, %c0_2] : memref<8x8x16xf32, #tpu.memory_space<vmem>>, vector<8x8x16xf32>
    %4 = vector.shape_cast %3 : vector<8x8x16xf32> to vector<64x16xf32>
    %c0_3 = arith.constant 0 : index
    %c0_4 = arith.constant 0 : index
    %5 = vector.load %arg3[%c0_3, %c0_4] : memref<16x128xf32, #tpu.memory_space<vmem>>, vector<16x128xf32>
    %cst = arith.constant dense<0.000000e+00> : vector<64x128xf32>
    %6 = tpu.matmul %4, %5, %cst {dimension_numbers = #tpu.dot_dimension_numbers<[1], [0], [0], [1], [0, 0, 1, 1], [], []>} : vector<64x16xf32>, vector<16x128xf32>, vector<64x128xf32> -> vector<64x128xf32>
    %c0_5 = arith.constant 0 : index
    %c0_6 = arith.constant 0 : index
    %7 = vector.load %arg5[%c0_5, %c0_6] : memref<1x128xf32, #tpu.memory_space<vmem>>, vector<1x128xf32>
    %8 = vector.broadcast %7 : vector<1x128xf32> to vector<64x128xf32>
    %9 = arith.addf %6, %8 : vector<64x128xf32>
    %10 = vector.shape_cast %9 : vector<64x128xf32> to vector<8x8x128xf32>
    %c0_7 = arith.constant 0 : index
    %c0_8 = arith.constant 0 : index
    %c0_9 = arith.constant 0 : index
    %11 = vector.load %arg9[%c0_7, %c0_8, %c0_9] : memref<8x8x128xf32, #tpu.memory_space<vmem>>, vector<8x8x128xf32>
    tpu.vector_store %arg9[%c0_7, %c0_8, %c0_9], %10 {strides = array<i32>} : memref<8x8x128xf32, #tpu.memory_space<vmem>>, vector<8x8x128xf32>,
    %c0_10 = arith.constant 0 : index
    %c0_11 = arith.constant 0 : index
    %12 = vector.load %arg4[%c0_10, %c0_11] : memref<32x128xf32, #tpu.memory_space<vmem>>, vector<32x128xf32>
    %c0_12 = arith.constant 0 : index
    %c0_13 = arith.constant 0 : index
    %13 = vector.load %arg10[%c0_12, %c0_13] : memref<8x32xf32, #tpu.memory_space<vmem>>, vector<8x32xf32>
    %c0_14 = arith.constant 0 : index
    %c0_15 = arith.constant 0 : index
    %14 = vector.load %arg11[%c0_14, %c0_15] : memref<8x32xf32, #tpu.memory_space<vmem>>, vector<8x32xf32>
    %c0_i32_16 = arith.constant 0 : i32
    %15 = arith.index_cast %c0_i32_16 : i32 to index
    %c0_17 = arith.constant 0 : index
    %c0_18 = arith.constant 0 : index
    %16 = vector.load %arg9[%15, %c0_17, %c0_18] : memref<8x8x128xf32, #tpu.memory_space<vmem>>, vector<1x8x128xf32>
    %17 = vector.shape_cast %16 : vector<1x8x128xf32> to vector<8x128xf32>
    %cst_19 = arith.constant dense<0.000000e+00> : vector<8x128xf32>
    %18 = tpu.matmul %13, %12, %cst_19 {dimension_numbers = #tpu.dot_dimension_numbers<[1], [0], [0], [1], [0, 0, 1, 1], [], []>} : vector<8x32xf32>, vector<32x128xf32>, vector<8x128xf32> -> vector<8x128xf32>
    %19 = arith.addf %17, %18 : vector<8x128xf32>
    %20 = vector.extract_strided_slice %19 {offsets = [0, 0], sizes = [8, 32], strides = [1, 1]} : vector<8x128xf32> to vector<8x32xf32>
    %21 = arith.negf %20 : vector<8x32xf32>
    %22 = math.exp %21 : vector<8x32xf32>
    %cst_20 = arith.constant 1.000000e+00 : f32
    %23 = vector.broadcast %cst_20 : f32 to vector<8x32xf32>
    %24 = arith.addf %23, %22 : vector<8x32xf32>
    %25 = arith.divf %23, %24 : vector<8x32xf32>
    %26 = vector.extract_strided_slice %19 {offsets = [0, 32], sizes = [8, 32], strides = [1, 1]} : vector<8x128xf32> to vector<8x32xf32>
    %27 = arith.negf %26 : vector<8x32xf32>
    %28 = math.exp %27 : vector<8x32xf32>
    %cst_21 = arith.constant 1.000000e+00 : f32
    %29 = vector.broadcast %cst_21 : f32 to vector<8x32xf32>
    %30 = arith.addf %29, %28 : vector<8x32xf32>
    %31 = arith.divf %29, %30 : vector<8x32xf32>
    %32 = vector.extract_strided_slice %19 {offsets = [0, 64], sizes = [8, 32], strides = [1, 1]} : vector<8x128xf32> to vector<8x32xf32>
    %33 = math.tanh %32 : vector<8x32xf32>
    %34 = vector.extract_strided_slice %19 {offsets = [0, 96], sizes = [8, 32], strides = [1, 1]} : vector<8x128xf32> to vector<8x32xf32>
    %35 = arith.negf %34 : vector<8x32xf32>
    %36 = math.exp %35 : vector<8x32xf32>
    %cst_22 = arith.constant 1.000000e+00 : f32
    %37 = vector.broadcast %cst_22 : f32 to vector<8x32xf32>
    %38 = arith.addf %37, %36 : vector<8x32xf32>
    %39 = arith.divf %37, %38 : vector<8x32xf32>
    %40 = arith.mulf %31, %14 : vector<8x32xf32>
    %41 = arith.mulf %25, %33 : vector<8x32xf32>
    %42 = arith.addf %40, %41 : vector<8x32xf32>
    %43 = math.tanh %42 : vector<8x32xf32>
    %44 = arith.mulf %39, %43 : vector<8x32xf32>
    %45 = arith.index_cast %c0_i32_16 : i32 to index
    %c0_23 = arith.constant 0 : index
    %c0_24 = arith.constant 0 : index
    %46 = vector.load %arg6[%45, %c0_23, %c0_24] : memref<8x8x32xf32, #tpu.memory_space<vmem>>, vector<1x8x32xf32>
    %47 = vector.shape_cast %46 : vector<1x8x32xf32> to vector<8x32xf32>
    %48 = vector.shape_cast %44 : vector<8x32xf32> to vector<1x8x32xf32>
    tpu.vector_store %arg6[%45, %c0_23, %c0_24], %48 {strides = array<i32>} : memref<8x8x32xf32, #tpu.memory_space<vmem>>, vector<1x8x32xf32>,
    %c1_i32 = arith.constant 1 : i32
    %49 = arith.index_cast %c1_i32 : i32 to index
    %c0_25 = arith.constant 0 : index
    %c0_26 = arith.constant 0 : index
    %50 = vector.load %arg9[%49, %c0_25, %c0_26] : memref<8x8x128xf32, #tpu.memory_space<vmem>>, vector<1x8x128xf32>
    %51 = vector.shape_cast %50 : vector<1x8x128xf32> to vector<8x128xf32>
    %cst_27 = arith.constant dense<0.000000e+00> : vector<8x128xf32>
    %52 = tpu.matmul %44, %12, %cst_27 {dimension_numbers = #tpu.dot_dimension_numbers<[1], [0], [0], [1], [0, 0, 1, 1], [], []>} : vector<8x32xf32>, vector<32x128xf32>, vector<8x128xf32> -> vector<8x128xf32>
    %53 = arith.addf %51, %52 : vector<8x128xf32>
    %54 = vector.extract_strided_slice %53 {offsets = [0, 0], sizes = [8, 32], strides = [1, 1]} : vector<8x128xf32> to vector<8x32xf32>
    %55 = arith.negf %54 : vector<8x32xf32>
    %56 = math.exp %55 : vector<8x32xf32>
    %cst_28 = arith.constant 1.000000e+00 : f32
    %57 = vector.broadcast %cst_28 : f32 to vector<8x32xf32>
    %58 = arith.addf %57, %56 : vector<8x32xf32>
    %59 = arith.divf %57, %58 : vector<8x32xf32>
    %60 = vector.extract_strided_slice %53 {offsets = [0, 32], sizes = [8, 32], strides = [1, 1]} : vector<8x128xf32> to vector<8x32xf32>
    %61 = arith.negf %60 : vector<8x32xf32>
    %62 = math.exp %61 : vector<8x32xf32>
    %cst_29 = arith.constant 1.000000e+00 : f32
    %63 = vector.broadcast %cst_29 : f32 to vector<8x32xf32>
    %64 = arith.addf %63, %62 : vector<8x32xf32>
    %65 = arith.divf %63, %64 : vector<8x32xf32>
    %66 = vector.extract_strided_slice %53 {offsets = [0, 64], sizes = [8, 32], strides = [1, 1]} : vector<8x128xf32> to vector<8x32xf32>
    %67 = math.tanh %66 : vector<8x32xf32>
    %68 = vector.extract_strided_slice %53 {offsets = [0, 96], sizes = [8, 32], strides = [1, 1]} : vector<8x128xf32> to vector<8x32xf32>
    %69 = arith.negf %68 : vector<8x32xf32>
    %70 = math.exp %69 : vector<8x32xf32>
    %cst_30 = arith.constant 1.000000e+00 : f32
    %71 = vector.broadcast %cst_30 : f32 to vector<8x32xf32>
    %72 = arith.addf %71, %70 : vector<8x32xf32>
    %73 = arith.divf %71, %72 : vector<8x32xf32>
    %74 = arith.mulf %65, %42 : vector<8x32xf32>
    %75 = arith.mulf %59, %67 : vector<8x32xf32>
    %76 = arith.addf %74, %75 : vector<8x32xf32>
    %77 = math.tanh %76 : vector<8x32xf32>
    %78 = arith.mulf %73, %77 : vector<8x32xf32>
    %79 = arith.index_cast %c1_i32 : i32 to index
    %c0_31 = arith.constant 0 : index
    %c0_32 = arith.constant 0 : index
    %80 = vector.load %arg6[%79, %c0_31, %c0_32] : memref<8x8x32xf32, #tpu.memory_space<vmem>>, vector<1x8x32xf32>
    %81 = vector.shape_cast %80 : vector<1x8x32xf32> to vector<8x32xf32>
    %82 = vector.shape_cast %78 : vector<8x32xf32> to vector<1x8x32xf32>
    tpu.vector_store %arg6[%79, %c0_31, %c0_32], %82 {strides = array<i32>} : memref<8x8x32xf32, #tpu.memory_space<vmem>>, vector<1x8x32xf32>,
    %c2_i32 = arith.constant 2 : i32
    %83 = arith.index_cast %c2_i32 : i32 to index
    %c0_33 = arith.constant 0 : index
    %c0_34 = arith.constant 0 : index
    %84 = vector.load %arg9[%83, %c0_33, %c0_34] : memref<8x8x128xf32, #tpu.memory_space<vmem>>, vector<1x8x128xf32>
    %85 = vector.shape_cast %84 : vector<1x8x128xf32> to vector<8x128xf32>
    %cst_35 = arith.constant dense<0.000000e+00> : vector<8x128xf32>
    %86 = tpu.matmul %78, %12, %cst_35 {dimension_numbers = #tpu.dot_dimension_numbers<[1], [0], [0], [1], [0, 0, 1, 1], [], []>} : vector<8x32xf32>, vector<32x128xf32>, vector<8x128xf32> -> vector<8x128xf32>
    %87 = arith.addf %85, %86 : vector<8x128xf32>
    %88 = vector.extract_strided_slice %87 {offsets = [0, 0], sizes = [8, 32], strides = [1, 1]} : vector<8x128xf32> to vector<8x32xf32>
    %89 = arith.negf %88 : vector<8x32xf32>
    %90 = math.exp %89 : vector<8x32xf32>
    %cst_36 = arith.constant 1.000000e+00 : f32
    %91 = vector.broadcast %cst_36 : f32 to vector<8x32xf32>
    %92 = arith.addf %91, %90 : vector<8x32xf32>
    %93 = arith.divf %91, %92 : vector<8x32xf32>
    %94 = vector.extract_strided_slice %87 {offsets = [0, 32], sizes = [8, 32], strides = [1, 1]} : vector<8x128xf32> to vector<8x32xf32>
    %95 = arith.negf %94 : vector<8x32xf32>
    %96 = math.exp %95 : vector<8x32xf32>
    %cst_37 = arith.constant 1.000000e+00 : f32
    %97 = vector.broadcast %cst_37 : f32 to vector<8x32xf32>
    %98 = arith.addf %97, %96 : vector<8x32xf32>
    %99 = arith.divf %97, %98 : vector<8x32xf32>
    %100 = vector.extract_strided_slice %87 {offsets = [0, 64], sizes = [8, 32], strides = [1, 1]} : vector<8x128xf32> to vector<8x32xf32>
    %101 = math.tanh %100 : vector<8x32xf32>
    %102 = vector.extract_strided_slice %87 {offsets = [0, 96], sizes = [8, 32], strides = [1, 1]} : vector<8x128xf32> to vector<8x32xf32>
    %103 = arith.negf %102 : vector<8x32xf32>
    %104 = math.exp %103 : vector<8x32xf32>
    %cst_38 = arith.constant 1.000000e+00 : f32
    %105 = vector.broadcast %cst_38 : f32 to vector<8x32xf32>
    %106 = arith.addf %105, %104 : vector<8x32xf32>
    %107 = arith.divf %105, %106 : vector<8x32xf32>
    %108 = arith.mulf %99, %76 : vector<8x32xf32>
    %109 = arith.mulf %93, %101 : vector<8x32xf32>
    %110 = arith.addf %108, %109 : vector<8x32xf32>
    %111 = math.tanh %110 : vector<8x32xf32>
    %112 = arith.mulf %107, %111 : vector<8x32xf32>
    %113 = arith.index_cast %c2_i32 : i32 to index
    %c0_39 = arith.constant 0 : index
    %c0_40 = arith.constant 0 : index
    %114 = vector.load %arg6[%113, %c0_39, %c0_40] : memref<8x8x32xf32, #tpu.memory_space<vmem>>, vector<1x8x32xf32>
    %115 = vector.shape_cast %114 : vector<1x8x32xf32> to vector<8x32xf32>
    %116 = vector.shape_cast %112 : vector<8x32xf32> to vector<1x8x32xf32>
    tpu.vector_store %arg6[%113, %c0_39, %c0_40], %116 {strides = array<i32>} : memref<8x8x32xf32, #tpu.memory_space<vmem>>, vector<1x8x32xf32>,
    %c3_i32 = arith.constant 3 : i32
    %117 = arith.index_cast %c3_i32 : i32 to index
    %c0_41 = arith.constant 0 : index
    %c0_42 = arith.constant 0 : index
    %118 = vector.load %arg9[%117, %c0_41, %c0_42] : memref<8x8x128xf32, #tpu.memory_space<vmem>>, vector<1x8x128xf32>
    %119 = vector.shape_cast %118 : vector<1x8x128xf32> to vector<8x128xf32>
    %cst_43 = arith.constant dense<0.000000e+00> : vector<8x128xf32>
    %120 = tpu.matmul %112, %12, %cst_43 {dimension_numbers = #tpu.dot_dimension_numbers<[1], [0], [0], [1], [0, 0, 1, 1], [], []>} : vector<8x32xf32>, vector<32x128xf32>, vector<8x128xf32> -> vector<8x128xf32>
    %121 = arith.addf %119, %120 : vector<8x128xf32>
    %122 = vector.extract_strided_slice %121 {offsets = [0, 0], sizes = [8, 32], strides = [1, 1]} : vector<8x128xf32> to vector<8x32xf32>
    %123 = arith.negf %122 : vector<8x32xf32>
    %124 = math.exp %123 : vector<8x32xf32>
    %cst_44 = arith.constant 1.000000e+00 : f32
    %125 = vector.broadcast %cst_44 : f32 to vector<8x32xf32>
    %126 = arith.addf %125, %124 : vector<8x32xf32>
    %127 = arith.divf %125, %126 : vector<8x32xf32>
    %128 = vector.extract_strided_slice %121 {offsets = [0, 32], sizes = [8, 32], strides = [1, 1]} : vector<8x128xf32> to vector<8x32xf32>
    %129 = arith.negf %128 : vector<8x32xf32>
    %130 = math.exp %129 : vector<8x32xf32>
    %cst_45 = arith.constant 1.000000e+00 : f32
    %131 = vector.broadcast %cst_45 : f32 to vector<8x32xf32>
    %132 = arith.addf %131, %130 : vector<8x32xf32>
    %133 = arith.divf %131, %132 : vector<8x32xf32>
    %134 = vector.extract_strided_slice %121 {offsets = [0, 64], sizes = [8, 32], strides = [1, 1]} : vector<8x128xf32> to vector<8x32xf32>
    %135 = math.tanh %134 : vector<8x32xf32>
    %136 = vector.extract_strided_slice %121 {offsets = [0, 96], sizes = [8, 32], strides = [1, 1]} : vector<8x128xf32> to vector<8x32xf32>
    %137 = arith.negf %136 : vector<8x32xf32>
    %138 = math.exp %137 : vector<8x32xf32>
    %cst_46 = arith.constant 1.000000e+00 : f32
    %139 = vector.broadcast %cst_46 : f32 to vector<8x32xf32>
    %140 = arith.addf %139, %138 : vector<8x32xf32>
    %141 = arith.divf %139, %140 : vector<8x32xf32>
    %142 = arith.mulf %133, %110 : vector<8x32xf32>
    %143 = arith.mulf %127, %135 : vector<8x32xf32>
    %144 = arith.addf %142, %143 : vector<8x32xf32>
    %145 = math.tanh %144 : vector<8x32xf32>
    %146 = arith.mulf %141, %145 : vector<8x32xf32>
    %147 = arith.index_cast %c3_i32 : i32 to index
    %c0_47 = arith.constant 0 : index
    %c0_48 = arith.constant 0 : index
    %148 = vector.load %arg6[%147, %c0_47, %c0_48] : memref<8x8x32xf32, #tpu.memory_space<vmem>>, vector<1x8x32xf32>
    %149 = vector.shape_cast %148 : vector<1x8x32xf32> to vector<8x32xf32>
    %150 = vector.shape_cast %146 : vector<8x32xf32> to vector<1x8x32xf32>
    tpu.vector_store %arg6[%147, %c0_47, %c0_48], %150 {strides = array<i32>} : memref<8x8x32xf32, #tpu.memory_space<vmem>>, vector<1x8x32xf32>,
    %c4_i32 = arith.constant 4 : i32
    %151 = arith.index_cast %c4_i32 : i32 to index
    %c0_49 = arith.constant 0 : index
    %c0_50 = arith.constant 0 : index
    %152 = vector.load %arg9[%151, %c0_49, %c0_50] : memref<8x8x128xf32, #tpu.memory_space<vmem>>, vector<1x8x128xf32>
    %153 = vector.shape_cast %152 : vector<1x8x128xf32> to vector<8x128xf32>
    %cst_51 = arith.constant dense<0.000000e+00> : vector<8x128xf32>
    %154 = tpu.matmul %146, %12, %cst_51 {dimension_numbers = #tpu.dot_dimension_numbers<[1], [0], [0], [1], [0, 0, 1, 1], [], []>} : vector<8x32xf32>, vector<32x128xf32>, vector<8x128xf32> -> vector<8x128xf32>
    %155 = arith.addf %153, %154 : vector<8x128xf32>
    %156 = vector.extract_strided_slice %155 {offsets = [0, 0], sizes = [8, 32], strides = [1, 1]} : vector<8x128xf32> to vector<8x32xf32>
    %157 = arith.negf %156 : vector<8x32xf32>
    %158 = math.exp %157 : vector<8x32xf32>
    %cst_52 = arith.constant 1.000000e+00 : f32
    %159 = vector.broadcast %cst_52 : f32 to vector<8x32xf32>
    %160 = arith.addf %159, %158 : vector<8x32xf32>
    %161 = arith.divf %159, %160 : vector<8x32xf32>
    %162 = vector.extract_strided_slice %155 {offsets = [0, 32], sizes = [8, 32], strides = [1, 1]} : vector<8x128xf32> to vector<8x32xf32>
    %163 = arith.negf %162 : vector<8x32xf32>
    %164 = math.exp %163 : vector<8x32xf32>
    %cst_53 = arith.constant 1.000000e+00 : f32
    %165 = vector.broadcast %cst_53 : f32 to vector<8x32xf32>
    %166 = arith.addf %165, %164 : vector<8x32xf32>
    %167 = arith.divf %165, %166 : vector<8x32xf32>
    %168 = vector.extract_strided_slice %155 {offsets = [0, 64], sizes = [8, 32], strides = [1, 1]} : vector<8x128xf32> to vector<8x32xf32>
    %169 = math.tanh %168 : vector<8x32xf32>
    %170 = vector.extract_strided_slice %155 {offsets = [0, 96], sizes = [8, 32], strides = [1, 1]} : vector<8x128xf32> to vector<8x32xf32>
    %171 = arith.negf %170 : vector<8x32xf32>
    %172 = math.exp %171 : vector<8x32xf32>
    %cst_54 = arith.constant 1.000000e+00 : f32
    %173 = vector.broadcast %cst_54 : f32 to vector<8x32xf32>
    %174 = arith.addf %173, %172 : vector<8x32xf32>
    %175 = arith.divf %173, %174 : vector<8x32xf32>
    %176 = arith.mulf %167, %144 : vector<8x32xf32>
    %177 = arith.mulf %161, %169 : vector<8x32xf32>
    %178 = arith.addf %176, %177 : vector<8x32xf32>
    %179 = math.tanh %178 : vector<8x32xf32>
    %180 = arith.mulf %175, %179 : vector<8x32xf32>
    %181 = arith.index_cast %c4_i32 : i32 to index
    %c0_55 = arith.constant 0 : index
    %c0_56 = arith.constant 0 : index
    %182 = vector.load %arg6[%181, %c0_55, %c0_56] : memref<8x8x32xf32, #tpu.memory_space<vmem>>, vector<1x8x32xf32>
    %183 = vector.shape_cast %182 : vector<1x8x32xf32> to vector<8x32xf32>
    %184 = vector.shape_cast %180 : vector<8x32xf32> to vector<1x8x32xf32>
    tpu.vector_store %arg6[%181, %c0_55, %c0_56], %184 {strides = array<i32>} : memref<8x8x32xf32, #tpu.memory_space<vmem>>, vector<1x8x32xf32>,
    %c5_i32 = arith.constant 5 : i32
    %185 = arith.index_cast %c5_i32 : i32 to index
    %c0_57 = arith.constant 0 : index
    %c0_58 = arith.constant 0 : index
    %186 = vector.load %arg9[%185, %c0_57, %c0_58] : memref<8x8x128xf32, #tpu.memory_space<vmem>>, vector<1x8x128xf32>
    %187 = vector.shape_cast %186 : vector<1x8x128xf32> to vector<8x128xf32>
    %cst_59 = arith.constant dense<0.000000e+00> : vector<8x128xf32>
    %188 = tpu.matmul %180, %12, %cst_59 {dimension_numbers = #tpu.dot_dimension_numbers<[1], [0], [0], [1], [0, 0, 1, 1], [], []>} : vector<8x32xf32>, vector<32x128xf32>, vector<8x128xf32> -> vector<8x128xf32>
    %189 = arith.addf %187, %188 : vector<8x128xf32>
    %190 = vector.extract_strided_slice %189 {offsets = [0, 0], sizes = [8, 32], strides = [1, 1]} : vector<8x128xf32> to vector<8x32xf32>
    %191 = arith.negf %190 : vector<8x32xf32>
    %192 = math.exp %191 : vector<8x32xf32>
    %cst_60 = arith.constant 1.000000e+00 : f32
    %193 = vector.broadcast %cst_60 : f32 to vector<8x32xf32>
    %194 = arith.addf %193, %192 : vector<8x32xf32>
    %195 = arith.divf %193, %194 : vector<8x32xf32>
    %196 = vector.extract_strided_slice %189 {offsets = [0, 32], sizes = [8, 32], strides = [1, 1]} : vector<8x128xf32> to vector<8x32xf32>
    %197 = arith.negf %196 : vector<8x32xf32>
    %198 = math.exp %197 : vector<8x32xf32>
    %cst_61 = arith.constant 1.000000e+00 : f32
    %199 = vector.broadcast %cst_61 : f32 to vector<8x32xf32>
    %200 = arith.addf %199, %198 : vector<8x32xf32>
    %201 = arith.divf %199, %200 : vector<8x32xf32>
    %202 = vector.extract_strided_slice %189 {offsets = [0, 64], sizes = [8, 32], strides = [1, 1]} : vector<8x128xf32> to vector<8x32xf32>
    %203 = math.tanh %202 : vector<8x32xf32>
    %204 = vector.extract_strided_slice %189 {offsets = [0, 96], sizes = [8, 32], strides = [1, 1]} : vector<8x128xf32> to vector<8x32xf32>
    %205 = arith.negf %204 : vector<8x32xf32>
    %206 = math.exp %205 : vector<8x32xf32>
    %cst_62 = arith.constant 1.000000e+00 : f32
    %207 = vector.broadcast %cst_62 : f32 to vector<8x32xf32>
    %208 = arith.addf %207, %206 : vector<8x32xf32>
    %209 = arith.divf %207, %208 : vector<8x32xf32>
    %210 = arith.mulf %201, %178 : vector<8x32xf32>
    %211 = arith.mulf %195, %203 : vector<8x32xf32>
    %212 = arith.addf %210, %211 : vector<8x32xf32>
    %213 = math.tanh %212 : vector<8x32xf32>
    %214 = arith.mulf %209, %213 : vector<8x32xf32>
    %215 = arith.index_cast %c5_i32 : i32 to index
    %c0_63 = arith.constant 0 : index
    %c0_64 = arith.constant 0 : index
    %216 = vector.load %arg6[%215, %c0_63, %c0_64] : memref<8x8x32xf32, #tpu.memory_space<vmem>>, vector<1x8x32xf32>
    %217 = vector.shape_cast %216 : vector<1x8x32xf32> to vector<8x32xf32>
    %218 = vector.shape_cast %214 : vector<8x32xf32> to vector<1x8x32xf32>
    tpu.vector_store %arg6[%215, %c0_63, %c0_64], %218 {strides = array<i32>} : memref<8x8x32xf32, #tpu.memory_space<vmem>>, vector<1x8x32xf32>,
    %c6_i32 = arith.constant 6 : i32
    %219 = arith.index_cast %c6_i32 : i32 to index
    %c0_65 = arith.constant 0 : index
    %c0_66 = arith.constant 0 : index
    %220 = vector.load %arg9[%219, %c0_65, %c0_66] : memref<8x8x128xf32, #tpu.memory_space<vmem>>, vector<1x8x128xf32>
    %221 = vector.shape_cast %220 : vector<1x8x128xf32> to vector<8x128xf32>
    %cst_67 = arith.constant dense<0.000000e+00> : vector<8x128xf32>
    %222 = tpu.matmul %214, %12, %cst_67 {dimension_numbers = #tpu.dot_dimension_numbers<[1], [0], [0], [1], [0, 0, 1, 1], [], []>} : vector<8x32xf32>, vector<32x128xf32>, vector<8x128xf32> -> vector<8x128xf32>
    %223 = arith.addf %221, %222 : vector<8x128xf32>
    %224 = vector.extract_strided_slice %223 {offsets = [0, 0], sizes = [8, 32], strides = [1, 1]} : vector<8x128xf32> to vector<8x32xf32>
    %225 = arith.negf %224 : vector<8x32xf32>
    %226 = math.exp %225 : vector<8x32xf32>
    %cst_68 = arith.constant 1.000000e+00 : f32
    %227 = vector.broadcast %cst_68 : f32 to vector<8x32xf32>
    %228 = arith.addf %227, %226 : vector<8x32xf32>
    %229 = arith.divf %227, %228 : vector<8x32xf32>
    %230 = vector.extract_strided_slice %223 {offsets = [0, 32], sizes = [8, 32], strides = [1, 1]} : vector<8x128xf32> to vector<8x32xf32>
    %231 = arith.negf %230 : vector<8x32xf32>
    %232 = math.exp %231 : vector<8x32xf32>
    %cst_69 = arith.constant 1.000000e+00 : f32
    %233 = vector.broadcast %cst_69 : f32 to vector<8x32xf32>
    %234 = arith.addf %233, %232 : vector<8x32xf32>
    %235 = arith.divf %233, %234 : vector<8x32xf32>
    %236 = vector.extract_strided_slice %223 {offsets = [0, 64], sizes = [8, 32], strides = [1, 1]} : vector<8x128xf32> to vector<8x32xf32>
    %237 = math.tanh %236 : vector<8x32xf32>
    %238 = vector.extract_strided_slice %223 {offsets = [0, 96], sizes = [8, 32], strides = [1, 1]} : vector<8x128xf32> to vector<8x32xf32>
    %239 = arith.negf %238 : vector<8x32xf32>
    %240 = math.exp %239 : vector<8x32xf32>
    %cst_70 = arith.constant 1.000000e+00 : f32
    %241 = vector.broadcast %cst_70 : f32 to vector<8x32xf32>
    %242 = arith.addf %241, %240 : vector<8x32xf32>
    %243 = arith.divf %241, %242 : vector<8x32xf32>
    %244 = arith.mulf %235, %212 : vector<8x32xf32>
    %245 = arith.mulf %229, %237 : vector<8x32xf32>
    %246 = arith.addf %244, %245 : vector<8x32xf32>
    %247 = math.tanh %246 : vector<8x32xf32>
    %248 = arith.mulf %243, %247 : vector<8x32xf32>
    %249 = arith.index_cast %c6_i32 : i32 to index
    %c0_71 = arith.constant 0 : index
    %c0_72 = arith.constant 0 : index
    %250 = vector.load %arg6[%249, %c0_71, %c0_72] : memref<8x8x32xf32, #tpu.memory_space<vmem>>, vector<1x8x32xf32>
    %251 = vector.shape_cast %250 : vector<1x8x32xf32> to vector<8x32xf32>
    %252 = vector.shape_cast %248 : vector<8x32xf32> to vector<1x8x32xf32>
    tpu.vector_store %arg6[%249, %c0_71, %c0_72], %252 {strides = array<i32>} : memref<8x8x32xf32, #tpu.memory_space<vmem>>, vector<1x8x32xf32>,
    %c7_i32 = arith.constant 7 : i32
    %253 = arith.index_cast %c7_i32 : i32 to index
    %c0_73 = arith.constant 0 : index
    %c0_74 = arith.constant 0 : index
    %254 = vector.load %arg9[%253, %c0_73, %c0_74] : memref<8x8x128xf32, #tpu.memory_space<vmem>>, vector<1x8x128xf32>
    %255 = vector.shape_cast %254 : vector<1x8x128xf32> to vector<8x128xf32>
    %cst_75 = arith.constant dense<0.000000e+00> : vector<8x128xf32>
    %256 = tpu.matmul %248, %12, %cst_75 {dimension_numbers = #tpu.dot_dimension_numbers<[1], [0], [0], [1], [0, 0, 1, 1], [], []>} : vector<8x32xf32>, vector<32x128xf32>, vector<8x128xf32> -> vector<8x128xf32>
    %257 = arith.addf %255, %256 : vector<8x128xf32>
    %258 = vector.extract_strided_slice %257 {offsets = [0, 0], sizes = [8, 32], strides = [1, 1]} : vector<8x128xf32> to vector<8x32xf32>
    %259 = arith.negf %258 : vector<8x32xf32>
    %260 = math.exp %259 : vector<8x32xf32>
    %cst_76 = arith.constant 1.000000e+00 : f32
    %261 = vector.broadcast %cst_76 : f32 to vector<8x32xf32>
    %262 = arith.addf %261, %260 : vector<8x32xf32>
    %263 = arith.divf %261, %262 : vector<8x32xf32>
    %264 = vector.extract_strided_slice %257 {offsets = [0, 32], sizes = [8, 32], strides = [1, 1]} : vector<8x128xf32> to vector<8x32xf32>
    %265 = arith.negf %264 : vector<8x32xf32>
    %266 = math.exp %265 : vector<8x32xf32>
    %cst_77 = arith.constant 1.000000e+00 : f32
    %267 = vector.broadcast %cst_77 : f32 to vector<8x32xf32>
    %268 = arith.addf %267, %266 : vector<8x32xf32>
    %269 = arith.divf %267, %268 : vector<8x32xf32>
    %270 = vector.extract_strided_slice %257 {offsets = [0, 64], sizes = [8, 32], strides = [1, 1]} : vector<8x128xf32> to vector<8x32xf32>
    %271 = math.tanh %270 : vector<8x32xf32>
    %272 = vector.extract_strided_slice %257 {offsets = [0, 96], sizes = [8, 32], strides = [1, 1]} : vector<8x128xf32> to vector<8x32xf32>
    %273 = arith.negf %272 : vector<8x32xf32>
    %274 = math.exp %273 : vector<8x32xf32>
    %cst_78 = arith.constant 1.000000e+00 : f32
    %275 = vector.broadcast %cst_78 : f32 to vector<8x32xf32>
    %276 = arith.addf %275, %274 : vector<8x32xf32>
    %277 = arith.divf %275, %276 : vector<8x32xf32>
    %278 = arith.mulf %269, %246 : vector<8x32xf32>
    %279 = arith.mulf %263, %271 : vector<8x32xf32>
    %280 = arith.addf %278, %279 : vector<8x32xf32>
    %281 = math.tanh %280 : vector<8x32xf32>
    %282 = arith.mulf %277, %281 : vector<8x32xf32>
    %283 = arith.index_cast %c7_i32 : i32 to index
    %c0_79 = arith.constant 0 : index
    %c0_80 = arith.constant 0 : index
    %284 = vector.load %arg6[%283, %c0_79, %c0_80] : memref<8x8x32xf32, #tpu.memory_space<vmem>>, vector<1x8x32xf32>
    %285 = vector.shape_cast %284 : vector<1x8x32xf32> to vector<8x32xf32>
    %286 = vector.shape_cast %282 : vector<8x32xf32> to vector<1x8x32xf32>
    tpu.vector_store %arg6[%283, %c0_79, %c0_80], %286 {strides = array<i32>} : memref<8x8x32xf32, #tpu.memory_space<vmem>>, vector<1x8x32xf32>,
    %c8_i32 = arith.constant 8 : i32
    %c0_81 = arith.constant 0 : index
    %c0_82 = arith.constant 0 : index
    %287 = vector.load %arg10[%c0_81, %c0_82] : memref<8x32xf32, #tpu.memory_space<vmem>>, vector<8x32xf32>
    tpu.vector_store %arg10[%c0_81, %c0_82], %282 {strides = array<i32>} : memref<8x32xf32, #tpu.memory_space<vmem>>, vector<8x32xf32>,
    %c0_83 = arith.constant 0 : index
    %c0_84 = arith.constant 0 : index
    %288 = vector.load %arg11[%c0_83, %c0_84] : memref<8x32xf32, #tpu.memory_space<vmem>>, vector<8x32xf32>
    tpu.vector_store %arg11[%c0_83, %c0_84], %280 {strides = array<i32>} : memref<8x32xf32, #tpu.memory_space<vmem>>, vector<8x32xf32>,
    %c0_i32_85 = arith.constant 0 : i32
    %289 = arith.cmpi eq, %arg1, %c0_i32_85 : i32
    %290 = arith.extui %289 : i1 to i32
    %c0_i32_86 = arith.constant 0 : i32
    %291 = arith.cmpi ne, %290, %c0_i32_86 : i32
    scf.if %291 {
      %c0_87 = arith.constant 0 : index
      %c0_88 = arith.constant 0 : index
      %292 = vector.load %arg7[%c0_87, %c0_88] : memref<8x32xf32, #tpu.memory_space<vmem>>, vector<8x32xf32>
      tpu.vector_store %arg7[%c0_87, %c0_88], %282 {strides = array<i32>} : memref<8x32xf32, #tpu.memory_space<vmem>>, vector<8x32xf32>,
      %c0_89 = arith.constant 0 : index
      %c0_90 = arith.constant 0 : index
      %293 = vector.load %arg8[%c0_89, %c0_90] : memref<8x32xf32, #tpu.memory_space<vmem>>, vector<8x32xf32>
      tpu.vector_store %arg8[%c0_89, %c0_90], %280 {strides = array<i32>} : memref<8x32xf32, #tpu.memory_space<vmem>>, vector<8x32xf32>,
    } else {
    }
    return
  }
  func.func @transform_0(%arg0: i32, %arg1: i32) -> (i32, i32, i32) {
    %c0_i32 = arith.constant 0 : i32
    %c0_i32_0 = arith.constant 0 : i32
    return %arg1, %arg0, %c0_i32 : i32, i32, i32
  }
  func.func @transform_1(%arg0: i32, %arg1: i32) -> (i32, i32) {
    %c0_i32 = arith.constant 0 : i32
    %c0_i32_0 = arith.constant 0 : i32
    %c0_i32_1 = arith.constant 0 : i32
    return %c0_i32, %c0_i32_0 : i32, i32
  }
  func.func @transform_2(%arg0: i32, %arg1: i32) -> (i32, i32) {
    %c0_i32 = arith.constant 0 : i32
    %c0_i32_0 = arith.constant 0 : i32
    %c0_i32_1 = arith.constant 0 : i32
    return %c0_i32, %c0_i32_0 : i32, i32
  }
  func.func @transform_3(%arg0: i32, %arg1: i32) -> (i32, i32) {
    %c0_i32 = arith.constant 0 : i32
    %c0_i32_0 = arith.constant 0 : i32
    %c0_i32_1 = arith.constant 0 : i32
    return %c0_i32, %c0_i32_0 : i32, i32
  }
  func.func @transform_4(%arg0: i32, %arg1: i32) -> (i32, i32, i32) {
    %c0_i32 = arith.constant 0 : i32
    %c0_i32_0 = arith.constant 0 : i32
    return %arg1, %arg0, %c0_i32 : i32, i32, i32
  }
  func.func @transform_5(%arg0: i32, %arg1: i32) -> (i32, i32) {
    %c0_i32 = arith.constant 0 : i32
    %c0_i32_0 = arith.constant 0 : i32
    return %arg0, %c0_i32 : i32, i32
  }
  func.func @transform_6(%arg0: i32, %arg1: i32) -> (i32, i32) {
    %c0_i32 = arith.constant 0 : i32
    %c0_i32_0 = arith.constant 0 : i32
    return %arg0, %c0_i32 : i32, i32
  }
}

</mosaic_0001>

<bundles_post_ra>
// kernel: lstm_forward.1
= control target key start
LH: loop header
LB: loop body
LE: loop exit
PB: predicated region body
PF: predicated region fallthrough
CT: control target
= control target key end

     0   :  { %12 = vsyncpa [#allocation6], 0  ;;  %s1876_s0 = inlined_call_operand.hbm [shape: f32[8,8,16], index: 0, kind: input, shape index: {}]   ;;  %s1877_s1 = inlined_call_operand.hbm [shape: f32[16,128], index: 1, kind: input, shape index: {}]   ;;  %s1878_s2 = inlined_call_operand.hbm [shape: f32[32,128], index: 2, kind: input, shape index: {}]   ;;  %s1879_s3 = inlined_call_operand.vmem [shape: f32[1,128], index: 3, kind: input, shape index: {}]   ;;  %s1880_s4 = inlined_call_operand.hbm [shape: f32[8,8,32], index: 4, kind: output, shape index: {0}]   ;;  %s1881_s5 = inlined_call_operand.hbm [shape: f32[8,32], index: 5, kind: output, shape index: {1}]   ;;  %s1882_s6 = inlined_call_operand.hbm [shape: f32[8,32], index: 6, kind: output, shape index: {2}]  }
   0x1   :  { %13 = vsyncpa [#allocation9], 0 }
   0x2   :  { %14 = vsyncpa [#allocation7], 0 }
   0x3   :  { %15 = vsyncpa [#allocation13], 0  ;;  %s1580_s21 = smov [#allocation8]   ;;  %s1581_s23 = smov [#allocation5]  }
   0x4   :  { %s33_s22 = sshll.u32 %s1580_s21, 4  ;;  %s21_s24 = sshll.u32 %s1581_s23, 4  ;;  %s34_s22 = int_to_ptr.vmem [resolvable:$true] %s33_s22  ;;  %s1629_s24 = int_to_ptr.vmem [resolvable:$true] %s21_s24 }
   0x5   :  { %s1440_s27 = scalar_lea.hbm %s1877_s1, 256 }
   0x6   :  { %p1441_p0 = scmp.ne.s32.totalorder %s1877_s1, %s1440_s27  ;;  %p1444_p1 = scmp.lt.u32.totalorder %s1440_s27, %s1877_s1 }
   0x8   :  { %p1446_p2 = pnand %p1444_p1, %p1441_p0 }
   0xa   :  { %1449 = shalt.err (!%p1446_p2)
}
   0xb   :  { %s1450_s8 = scalar_lea.vmem %s34_s22, 256  ;;  %p1455_p4 = scmp.lt.s32.totalorder %s34_s22, %s34_s22 }
   0xc   :  { %p1451_p3 = scmp.ne.s32.totalorder %s34_s22, %s1450_s8  ;;  %p1456_p5 = scmp.lt.s32.totalorder %s1450_s8, %s1450_s8 }
   0xe   :  { %p1457_p6 = por %p1456_p5, %p1455_p4 }
  0x10   :  { %p1458_p7 = pnand %p1457_p6, %p1451_p3 }
  0x12   :  { %1461 = shalt.err (!%p1458_p7)
}
  0x13   :  { %s1582_s9 = smov 128   ;;  %s1583_s10 = smov 8  }
  0x14   :  { %39 = dma.hbm_to_vmem [thread:$0]  %s1877_s1, 256, %s34_s22, [#allocation9], %s1582_s9, %s1582_s9, %s1583_s10  }
  0x15   :  { %s1462_s15 = scalar_lea.hbm %s1876_s0, 1024 }
  0x16   :  { %p1463_p8 = scmp.ne.s32.totalorder %s1876_s0, %s1462_s15  ;;  %p1466_p9 = scmp.lt.u32.totalorder %s1462_s15, %s1876_s0 }
  0x18   :  { %p1468_p10 = pnand %p1466_p9, %p1463_p8 }
  0x1a   :  { %1471 = shalt.err (!%p1468_p10)
}
  0x1b   :  { %s1472_s20 = scalar_lea.vmem %s1629_s24, 1024  ;;  %p1477_p12 = scmp.lt.s32.totalorder %s1629_s24, %s1629_s24 }
  0x1c   :  { %p1473_p11 = scmp.ne.s32.totalorder %s1629_s24, %s1472_s20  ;;  %p1478_p13 = scmp.lt.s32.totalorder %s1472_s20, %s1472_s20 }
  0x1e   :  { %p1479_p0 = por %p1478_p13, %p1477_p12 }
  0x20   :  { %p1480_p1 = pnand %p1479_p0, %p1473_p11 }
  0x22   :  { %1483 = shalt.err (!%p1480_p1)
}
  0x23   :  { %27 = dma.hbm_to_vmem [thread:$0]  %s1876_s0, 1024, %s1629_s24, [#allocation6], %s1582_s9, %s1582_s9, %s1583_s10  }
  0x24   :  { %s1584_s22 = smov [#allocation10]   ;;  %s1484_s27 = scalar_lea.hbm %s1878_s2, 512 }
  0x25   :  { %s45_s23 = sshll.u32 %s1584_s22, 4  ;;  %p1485_p2 = scmp.ne.s32.totalorder %s1878_s2, %s1484_s27  ;;  %s46_s23 = int_to_ptr.vmem [resolvable:$true] %s45_s23 }
  0x26   :  { %p1488_p3 = scmp.lt.u32.totalorder %s1484_s27, %s1878_s2 }
  0x28   :  { %p1490_p4 = pnand %p1488_p3, %p1485_p2 }
  0x2a   :  { %1493 = shalt.err (!%p1490_p4)
}
  0x2b   :  { %s1494_s8 = scalar_lea.vmem %s46_s23, 512  ;;  %p1499_p6 = scmp.lt.s32.totalorder %s46_s23, %s46_s23 }
  0x2c   :  { %p1495_p5 = scmp.ne.s32.totalorder %s46_s23, %s1494_s8  ;;  %p1500_p7 = scmp.lt.s32.totalorder %s1494_s8, %s1494_s8 }
  0x2e   :  { %p1501_p8 = por %p1500_p7, %p1499_p6 }
  0x30   :  { %p1502_p9 = pnand %p1501_p8, %p1495_p5 }
  0x32   :  { %1505 = shalt.err (!%p1502_p9)
}
  0x33   :  { %51 = dma.hbm_to_vmem [thread:$0]  %s1878_s2, 512, %s46_s23, [#allocation9], %s1582_s9, %s1582_s9, %s1583_s10  }
  0x34   :  { %1572 = dma.done.wait [#allocation6], 1024  }
  0x35   :  { %1573 = vsyncadd [#allocation6], 4294966272 }
  0x36   :  { %1574 = dma.done.wait [#allocation9], 768  }
  0x37   :  { %1575 = vsyncadd [#allocation9], 4294966528  ;;  %v1585_v0 = vmov 0.0|0.0   ;;  %vm1586_vm0 = vmmov 0   ;;  %v1587_v1 = vmov 0.0   ;;  %vm67_vm1 = vcmask 261120  }
  0x38   :  { %1314 = vmatprep.subr.bf16.mxu1 %v1585_v0  ;;  %1230 = vmatprep.mubr.msk.f32.mxu1 %vm1586_vm0, %v1587_v1  ;;  %68 = vst.msk [vmem:[#allocation3] sm:$0xff] %vm67_vm1, %v1587_v1  ;;  %69 = vst.msk [vmem:[#allocation4] sm:$0xff] %vm67_vm1, %v1587_v1  ;;  %vm87_vm2 = vcmask 130048   ;;  %v78_v2 = vld [vmem:[#allocation8] sm:$0xff]  ;;  %v79_v3 = vld [vmem:[#allocation8 + $0x8] sm:$0xff]  ;;  %s1588_s12 = smov 64  }
  0x39   :  { %v225_v4 = vld [vmem:[#allocation10] sm:$0xff]  ;;  %v1310_v5 = vpack.c.bf16 %v79_v3, %v78_v2  ;;  %v226_v6 = vld [vmem:[#allocation10 + $0x8] sm:$0xff]  ;;  %v70_v7 = vld [vmem:[#allocation5] sm:$0xff]  ;;  %s1589_s13 = smov 32   ;;  %s1591_s14 = smov [#allocation12]  }
  0x3a   :  { %v1688_v8 = vpack.c.bf16 %v226_v6, %v225_v4  ;;  %1210 = vmatprep.mubr.msk.f32.mxu0 %vm87_vm2, %v70_v7  ;;  %v227_v9 = vld [vmem:[#allocation10 + $0x10] sm:$0xff]  ;;  %v228_v10 = vld [vmem:[#allocation10 + $0x18] sm:$0xff]  ;;  %v1713_v14 = vld [vmem:[%s1879_s3] ss:$0 sm:$0xff]  ;;  %s1590_s3 = smov 96   ;;  %s1104_s15 = sshll.u32 %s1591_s14, 4  ;;  %s1105_s15 = int_to_ptr.vmem [resolvable:$true] %s1104_s15 }
  0x3b   :  { %1311 = vmatprep.subr.bf16.mxu0 %v1310_v5  ;;  %v71_v11 = vld [vmem:[#allocation5 + $0x8] sm:$0xff]  ;;  %v1692_v12 = vpack.c.bf16 %v228_v10, %v227_v9  ;;  %v72_v51 = vld [vmem:[#allocation5 + $0x10] sm:$0xff]  ;;  %v73_v52 = vld [vmem:[#allocation5 + $0x18] sm:$0xff]  ;;  %s1592_s16 = smov [#allocation11]   ;;  %s1593_s18 = smov [#allocation14]  }
  0x3c   :  { %1316 = vmatpush3.bf16.msra.mxu1 %v1688_v8  ;;  %1313 = vmatpush3.bf16.msra.mxu0 %v1310_v5  ;;  %v74_v53 = vld [vmem:[#allocation5 + $0x20] sm:$0xff]  ;;  %v75_v54 = vld [vmem:[#allocation5 + $0x28] sm:$0xff]  ;;  %v76_v55 = vld [vmem:[#allocation5 + $0x30] sm:$0xff]  ;;  %s1091_s17 = sshll.u32 %s1592_s16, 4  ;;  %s1114_s19 = sshll.u32 %s1593_s18, 4  ;;  %s1820_s17 = int_to_ptr.vmem [resolvable:$true] %s1091_s17  ;;  %s1825_s19 = int_to_ptr.vmem [resolvable:$true] %s1114_s19 }
  0x3d   :  { %1317 = vmatprep.subr.bf16.mxu1 %v1585_v0  ;;  %1326 = vmatprep.subr.bf16.mxu0 %v1585_v0  ;;  %v77_v56 = vld [vmem:[#allocation5 + $0x38] sm:$0xff]  ;;  %s1506_s20 = scalar_lea.vmem %s1105_s15, 128  ;;  %p1511_p11 = scmp.lt.s32.totalorder %s1105_s15, %s1105_s15 }
  0x3e   :  { %p1507_p10 = scmp.ne.s32.totalorder %s1105_s15, %s1506_s20  ;;  %p1512_p12 = scmp.lt.s32.totalorder %s1506_s20, %s1506_s20 }
  0x3f   :  { %1211 = vmatmul.mubr.msk.f32.vlgmr.msra.gmra.mrb[0].mxu0 %vm87_vm2, %v71_v11  ;;  %v229_v13 = vld [vmem:[#allocation3] sm:$0xff]  ;;  %v230_v22 = vld [vmem:[#allocation4] sm:$0xff] }
  0x40   :  { %1319 = vmatpush3.bf16.msra.mxu1 %v1692_v12  ;;  %1328 = vmatpush3.bf16.msra.mxu0 %v1688_v8  ;;  %p1513_p13 = por %p1512_p12, %p1511_p11 }
  0x41   :  { %1320 = vmatprep.subr.bf16.mxu1 %v1585_v0  ;;  %1329 = vmatprep.subr.bf16.mxu0 %v1585_v0 }
  0x42   :  { %1213 = vmatprep.mubr.msk.f32.mxu0 %vm87_vm2, %v72_v51  ;;  %p1514_p0 = pnand %p1513_p13, %p1507_p10 }
  0x43   :  { %1231 = vmatmul.mubr.msk.f32.vlgmr.msra.gmra.mrb[0].mxu1 %vm67_vm1, %v229_v13  ;;  %1214 = vmatmul.mubr.msk.f32.gmra.mrb[2].mxu0 %vm87_vm2, %v73_v52 }
  0x44   :  { %1322 = vmatpush3.bf16.msra.mxu1 %v1688_v8  ;;  %1241 = vmatprep.mubr.msk.f32.mxu1 %vm1586_vm0, %v1587_v1 }
  0x45   :  { %1323 = vmatprep.subr.bf16.mxu1 %v1585_v0  ;;  %1331 = vmatpush3.bf16.msra.mxu0 %v1692_v12 }
  0x46   :  { %1338 = vmatprep.subr.bf16.mxu0 %v1585_v0  ;;  %1216 = vmatprep.mubr.msk.f32.mxu0 %vm87_vm2, %v74_v53 }
  0x47   :  { %1217 = vmatmul.mubr.msk.f32.gmra.mrb[4].mxu0 %vm87_vm2, %v75_v54 }
  0x48   :  { %1325 = vmatpush3.bf16.msra.mxu1 %v1692_v12  ;;  %1219 = vmatprep.mubr.msk.f32.mxu0 %vm87_vm2, %v76_v55 }
  0x49   :  { %1332 = vmatprep.subr.bf16.mxu1 %v1585_v0 }
  0x4b   :  { %1220 = vmatmul.mubr.msk.f32.gmra.mrb[6].mxu0 %vm87_vm2, %v77_v56 }
  0x4c   :  { %1252 = vmatprep.mubr.msk.f32.mxu0 %vm1586_vm0, %v1587_v1 }
 0x112   :  { %v1212_v15 = vpop.f32.mrb[0].mxu0 }
 0x113   :  { %v178_v16 = vpop.f32.mrb[1].mxu0  ;;  %v184_v37 = vadd.f32 %v1212_v15, %v1713_v14 }
 0x114   :  { %v179_v17 = vadd.f32 %v1713_v14, %v178_v16 }
 0x116   :  { %v302_v18 = vpop.f32.mrb[0].mxu1  ;;  %v1215_v60 = vpop.f32.mrb[2].mxu0 }
 0x117   :  { %v306_v19 = vadd.f32 %v302_v18, %v179_v17  ;;  %v1232_v20 = vpop.f32.mrb[1].mxu1  ;;  %v188_v61 = vpop.f32.mrb[3].mxu0 }
 0x118   :  { %v189_v5 = vadd.f32 %v1713_v14, %v188_v61 }
 0x119   :  { %1376 = vtanh.f32 %v306_v19  ;;  %v1141_v23 = vmul.f32 -1.442695, %v306_v19 }
 0x11a   :  { %v1742_v62 = vpop.f32.mrb[4].mxu0 }
 0x11b   :  { %1378 = vpow2.f32 %v1141_v23  ;;  %v1744_v63 = vpop.f32.mrb[5].mxu0 }
 0x11e   :  { %v1746_v2 = vpop.f32.mrb[6].mxu0 }
 0x11f   :  { %v1748_v3 = vpop.f32.mrb[7].mxu0 }
 0x123   :  { %v1377_v21 = vpop.eup %1376 }
 0x124   :  { %320 = vrot.lane.b32.xlu0 %v1377_v21, %s1588_s12 }
 0x125   :  { %v1379_v24 = vpop.eup %1378 }
 0x126   :  { %v310_v25 = vadd.f32 1.0, %v1379_v24 }
 0x128   :  { %315 = vrot.lane.b32.xlu0 %v230_v22, %s1589_s13  ;;  %1380 = vrcp.f32 %v310_v25 }
 0x132   :  { %v1381_v26 = vpop.eup %1380 }
 0x196   :  { %v321_v27 = vpop.permute.xlu0 %320 }
 0x197   :  { %v323_v28 = vmul.f32 %v1381_v26, %v321_v27 }
 0x199   :  { %325 = vrot.lane.b32.xlu1 %v323_v28, %s1589_s13 }
 0x19a   :  { %v316_v29 = vpop.permute.xlu0 %315 }
 0x19b   :  { %v318_v30 = vmul.f32 %v1381_v26, %v316_v29 }
 0x20b   :  { %v326_v31 = vpop.permute.xlu1 %325 }
 0x20c   :  { %v328_v32 = vadd.f32 %v326_v31, %v318_v30 }
 0x20e   :  { %1382 = vtanh.f32 %v328_v32 }
 0x218   :  { %v1383_v33 = vpop.eup %1382 }
 0x219   :  { %331 = vrot.lane.b32.xlu1 %v1383_v33, %s1588_s12 }
 0x28b   :  { %v332_v34 = vpop.permute.xlu1 %331 }
 0x28c   :  { %v334_v35 = vmul.f32 %v1381_v26, %v332_v34  ;;  %v194_v26 = vadd.f32 %v1215_v60, %v1713_v14 }
 0x28e   :  { %336 = vrot.lane.b32.xlu0 %v334_v35, %s1589_s13 }
 0x300   :  { %v337_v36 = vpop.permute.xlu0 %336 }
 0x301   :  { %339 = vst.msk [vmem:[#allocation11] sm:$0xff] %vm67_vm1, %v337_v36  ;;  %1242 = vmatmul.mubr.msk.f32.vlgmr.msra.gmra.mrb[2].mxu1 %vm67_vm1, %v337_v36 }
 0x302   :  { %1334 = vmatpush3.bf16.msra.mxu1 %v1688_v8  ;;  %1263 = vmatprep.mubr.msk.f32.mxu1 %vm1586_vm0, %v1587_v1 }
 0x303   :  { %1335 = vmatprep.subr.bf16.mxu1 %v1585_v0 }
 0x306   :  { %1337 = vmatpush3.bf16.msra.mxu1 %v1692_v12 }
 0x307   :  { %1344 = vmatprep.subr.bf16.mxu1 %v1585_v0 }
 0x3d4   :  { %v410_v38 = vpop.f32.mrb[2].mxu1 }
 0x3d5   :  { %v414_v39 = vadd.f32 %v410_v38, %v184_v37  ;;  %v1243_v40 = vpop.f32.mrb[3].mxu1 }
 0x3d7   :  { %1384 = vtanh.f32 %v414_v39  ;;  %v1143_v42 = vmul.f32 -1.442695, %v414_v39 }
 0x3d9   :  { %1386 = vpow2.f32 %v1143_v42 }
 0x3e1   :  { %v1385_v41 = vpop.eup %1384 }
 0x3e2   :  { %424 = vrot.lane.b32.xlu1 %v1385_v41, %s1588_s12 }
 0x3e3   :  { %v1387_v43 = vpop.eup %1386 }
 0x3e4   :  { %v418_v44 = vadd.f32 1.0, %v1387_v43 }
 0x3e6   :  { %1388 = vrcp.f32 %v418_v44  ;;  %v199_v44 = vadd.f32 %v1713_v14, %v1744_v63  ;;  %v204_v63 = vadd.f32 %v1742_v62, %v1713_v14 }
 0x3f0   :  { %v1389_v45 = vpop.eup %1388 }
 0x3f1   :  { %v422_v48 = vmul.f32 %v1389_v45, %v328_v32 }
 0x454   :  { %v425_v46 = vpop.permute.xlu1 %424 }
 0x455   :  { %v427_v47 = vmul.f32 %v1389_v45, %v425_v46 }
 0x457   :  { %429 = vrot.lane.b32.xlu0 %v427_v47, %s1589_s13 }
 0x4c9   :  { %v430_v49 = vpop.permute.xlu0 %429 }
 0x4ca   :  { %v432_v50 = vadd.f32 %v430_v49, %v422_v48 }
 0x4cc   :  { %1390 = vtanh.f32 %v432_v50 }
 0x4d6   :  { %v1391_v57 = vpop.eup %1390 }
 0x4d7   :  { %435 = vrot.lane.b32.xlu1 %v1391_v57, %s1588_s12 }
 0x549   :  { %v436_v58 = vpop.permute.xlu1 %435 }
 0x54a   :  { %v438_v59 = vmul.f32 %v1389_v45, %v436_v58 }
 0x54c   :  { %440 = vrot.lane.b32.xlu0 %v438_v59, %s1589_s13 }
 0x5be   :  { %v441_v4 = vpop.permute.xlu0 %440 }
 0x5bf   :  { %444 = vst.msk [vmem:[#allocation11 + $0x8] sm:$0xff] %vm67_vm1, %v441_v4  ;;  %1253 = vmatmul.mubr.msk.f32.vlgmr.msra.gmra.mrb[8].mxu0 %vm67_vm1, %v441_v4 }
 0x5c0   :  { %1340 = vmatpush3.bf16.msra.mxu0 %v1688_v8  ;;  %1274 = vmatprep.mubr.msk.f32.mxu0 %vm1586_vm0, %v1587_v1 }
 0x5c1   :  { %1341 = vmatprep.subr.bf16.mxu0 %v1585_v0 }
 0x5c4   :  { %1343 = vmatpush3.bf16.msra.mxu0 %v1692_v12 }
 0x5c5   :  { %1350 = vmatprep.subr.bf16.mxu0 %v1585_v0 }
 0x692   :  { %v515_v6 = vpop.f32.mrb[8].mxu0 }
 0x693   :  { %v519_v7 = vadd.f32 %v515_v6, %v189_v5  ;;  %v1254_v9 = vpop.f32.mrb[9].mxu0 }
 0x695   :  { %1392 = vtanh.f32 %v519_v7  ;;  %v1145_v11 = vmul.f32 -1.442695, %v519_v7 }
 0x697   :  { %1394 = vpow2.f32 %v1145_v11 }
 0x69f   :  { %v1393_v10 = vpop.eup %1392 }
 0x6a0   :  { %529 = vrot.lane.b32.xlu1 %v1393_v10, %s1588_s12 }
 0x6a1   :  { %v1395_v13 = vpop.eup %1394 }
 0x6a2   :  { %v523_v15 = vadd.f32 1.0, %v1395_v13 }
 0x6a4   :  { %1396 = vrcp.f32 %v523_v15 }
 0x6ae   :  { %v1397_v16 = vpop.eup %1396 }
 0x6af   :  { %v527_v19 = vmul.f32 %v1397_v16, %v432_v50 }
 0x712   :  { %v530_v17 = vpop.permute.xlu1 %529 }
 0x713   :  { %v532_v18 = vmul.f32 %v1397_v16, %v530_v17 }
 0x715   :  { %534 = vrot.lane.b32.xlu0 %v532_v18, %s1589_s13 }
 0x787   :  { %v535_v20 = vpop.permute.xlu0 %534 }
 0x788   :  { %v537_v21 = vadd.f32 %v535_v20, %v527_v19  ;;  %v209_v19 = vadd.f32 %v1713_v14, %v1748_v3 }
 0x78a   :  { %1398 = vtanh.f32 %v537_v21 }
 0x794   :  { %v1399_v22 = vpop.eup %1398 }
 0x795   :  { %540 = vrot.lane.b32.xlu1 %v1399_v22, %s1588_s12 }
 0x807   :  { %v541_v23 = vpop.permute.xlu1 %540 }
 0x808   :  { %v543_v24 = vmul.f32 %v1397_v16, %v541_v23 }
 0x80a   :  { %545 = vrot.lane.b32.xlu0 %v543_v24, %s1589_s13 }
 0x87c   :  { %v546_v25 = vpop.permute.xlu0 %545 }
 0x87d   :  { %549 = vst.msk [vmem:[#allocation11 + $0x10] sm:$0xff] %vm67_vm1, %v546_v25  ;;  %1264 = vmatmul.mubr.msk.f32.vlgmr.msra.gmra.mrb[4].mxu1 %vm67_vm1, %v546_v25 }
 0x87e   :  { %1346 = vmatpush3.bf16.msra.mxu1 %v1688_v8  ;;  %1285 = vmatprep.mubr.msk.f32.mxu1 %vm1586_vm0, %v1587_v1 }
 0x87f   :  { %1347 = vmatprep.subr.bf16.mxu1 %v1585_v0 }
 0x882   :  { %1349 = vmatpush3.bf16.msra.mxu1 %v1692_v12 }
 0x883   :  { %1356 = vmatprep.subr.bf16.mxu1 %v1585_v0 }
 0x950   :  { %v620_v27 = vpop.f32.mrb[4].mxu1 }
 0x951   :  { %v624_v28 = vadd.f32 %v620_v27, %v194_v26  ;;  %v1265_v29 = vpop.f32.mrb[5].mxu1 }
 0x953   :  { %1400 = vtanh.f32 %v624_v28  ;;  %v1147_v31 = vmul.f32 -1.442695, %v624_v28 }
 0x955   :  { %1402 = vpow2.f32 %v1147_v31 }
 0x95d   :  { %v1401_v30 = vpop.eup %1400 }
 0x95e   :  { %634 = vrot.lane.b32.xlu1 %v1401_v30, %s1588_s12 }
 0x95f   :  { %v1403_v32 = vpop.eup %1402 }
 0x960   :  { %v628_v33 = vadd.f32 1.0, %v1403_v32 }
 0x962   :  { %1404 = vrcp.f32 %v628_v33 }
 0x96c   :  { %v1405_v34 = vpop.eup %1404 }
 0x96d   :  { %v632_v37 = vmul.f32 %v1405_v34, %v537_v21 }
 0x9d0   :  { %v635_v35 = vpop.permute.xlu1 %634 }
 0x9d1   :  { %v637_v36 = vmul.f32 %v1405_v34, %v635_v35 }
 0x9d3   :  { %639 = vrot.lane.b32.xlu0 %v637_v36, %s1589_s13  ;;  %v214_v36 = vadd.f32 %v1746_v2, %v1713_v14 }
 0xa45   :  { %v640_v38 = vpop.permute.xlu0 %639 }
 0xa46   :  { %v642_v39 = vadd.f32 %v640_v38, %v632_v37 }
 0xa48   :  { %1406 = vtanh.f32 %v642_v39 }
 0xa52   :  { %v1407_v40 = vpop.eup %1406 }
 0xa53   :  { %645 = vrot.lane.b32.xlu1 %v1407_v40, %s1588_s12 }
 0xac5   :  { %v646_v41 = vpop.permute.xlu1 %645 }
 0xac6   :  { %v648_v42 = vmul.f32 %v1405_v34, %v646_v41 }
 0xac8   :  { %650 = vrot.lane.b32.xlu0 %v648_v42, %s1589_s13 }
 0xb3a   :  { %v651_v43 = vpop.permute.xlu0 %650 }
 0xb3b   :  { %654 = vst.msk [vmem:[#allocation11 + $0x18] sm:$0xff] %vm67_vm1, %v651_v43  ;;  %1275 = vmatmul.mubr.msk.f32.vlgmr.msra.gmra.mrb[10].mxu0 %vm67_vm1, %v651_v43 }
 0xb3c   :  { %1352 = vmatpush3.bf16.msra.mxu0 %v1688_v8  ;;  %1296 = vmatprep.mubr.msk.f32.mxu0 %vm1586_vm0, %v1587_v1 }
 0xb3d   :  { %1353 = vmatprep.subr.bf16.mxu0 %v1585_v0 }
 0xb40   :  { %1355 = vmatpush3.bf16.msra.mxu0 %v1692_v12 }
 0xc0e   :  { %v725_v45 = vpop.f32.mrb[10].mxu0 }
 0xc0f   :  { %v729_v46 = vadd.f32 %v725_v45, %v199_v44  ;;  %v1276_v47 = vpop.f32.mrb[11].mxu0 }
 0xc11   :  { %1408 = vtanh.f32 %v729_v46  ;;  %v1149_v49 = vmul.f32 -1.442695, %v729_v46 }
 0xc13   :  { %1410 = vpow2.f32 %v1149_v49 }
 0xc1b   :  { %v1409_v48 = vpop.eup %1408 }
 0xc1c   :  { %739 = vrot.lane.b32.xlu1 %v1409_v48, %s1588_s12 }
 0xc1d   :  { %v1411_v50 = vpop.eup %1410 }
 0xc1e   :  { %v733_v51 = vadd.f32 1.0, %v1411_v50 }
 0xc20   :  { %1412 = vrcp.f32 %v733_v51 }
 0xc2a   :  { %v1413_v52 = vpop.eup %1412 }
 0xc2b   :  { %v737_v55 = vmul.f32 %v1413_v52, %v642_v39 }
 0xc8e   :  { %v740_v53 = vpop.permute.xlu1 %739 }
 0xc8f   :  { %v742_v54 = vmul.f32 %v1413_v52, %v740_v53 }
 0xc91   :  { %744 = vrot.lane.b32.xlu0 %v742_v54, %s1589_s13 }
 0xd03   :  { %v745_v56 = vpop.permute.xlu0 %744 }
 0xd04   :  { %v747_v57 = vadd.f32 %v745_v56, %v737_v55 }
 0xd06   :  { %1414 = vtanh.f32 %v747_v57 }
 0xd10   :  { %v1415_v58 = vpop.eup %1414 }
 0xd11   :  { %750 = vrot.lane.b32.xlu1 %v1415_v58, %s1588_s12 }
 0xd83   :  { %v751_v59 = vpop.permute.xlu1 %750 }
 0xd84   :  { %v753_v60 = vmul.f32 %v1413_v52, %v751_v59 }
 0xd86   :  { %755 = vrot.lane.b32.xlu0 %v753_v60, %s1589_s13 }
 0xdf8   :  { %v756_v61 = vpop.permute.xlu0 %755 }
 0xdf9   :  { %759 = vst.msk [vmem:[#allocation11 + $0x20] sm:$0xff] %vm67_vm1, %v756_v61  ;;  %1286 = vmatmul.mubr.msk.f32.vlgmr.msra.gmra.mrb[6].mxu1 %vm67_vm1, %v756_v61 }
 0xdfa   :  { %1358 = vmatpush3.bf16.msra.mxu1 %v1688_v8  ;;  %1307 = vmatprep.mubr.msk.f32.mxu1 %vm1586_vm0, %v1587_v1 }
 0xdfb   :  { %1359 = vmatprep.subr.bf16.mxu1 %v1585_v0 }
 0xdfe   :  { %1361 = vmatpush3.bf16.msra.mxu1 %v1692_v12 }
 0xecc   :  { %v830_v4 = vpop.f32.mrb[6].mxu1 }
 0xecd   :  { %v834_v5 = vadd.f32 %v830_v4, %v204_v63  ;;  %v1287_v6 = vpop.f32.mrb[7].mxu1 }
 0xecf   :  { %1416 = vtanh.f32 %v834_v5  ;;  %v1151_v9 = vmul.f32 -1.442695, %v834_v5 }
 0xed1   :  { %1418 = vpow2.f32 %v1151_v9 }
 0xed9   :  { %v1417_v7 = vpop.eup %1416 }
 0xeda   :  { %844 = vrot.lane.b32.xlu1 %v1417_v7, %s1588_s12 }
 0xedb   :  { %v1419_v8 = vpop.eup %1418 }
 0xedc   :  { %v838_v10 = vadd.f32 1.0, %v1419_v8 }
 0xede   :  { %1420 = vrcp.f32 %v838_v10 }
 0xee8   :  { %v1421_v1 = vpop.eup %1420 }
 0xee9   :  { %v842_v12 = vmul.f32 %v1421_v1, %v747_v57 }
 0xf4c   :  { %v845_v11 = vpop.permute.xlu1 %844 }
 0xf4d   :  { %v847_v0 = vmul.f32 %v1421_v1, %v845_v11 }
 0xf4f   :  { %849 = vrot.lane.b32.xlu0 %v847_v0, %s1589_s13 }
 0xfc1   :  { %v850_v13 = vpop.permute.xlu0 %849 }
 0xfc2   :  { %v852_v62 = vadd.f32 %v850_v13, %v842_v12 }
 0xfc4   :  { %1422 = vtanh.f32 %v852_v62 }
 0xfce   :  { %v1423_v15 = vpop.eup %1422 }
 0xfcf   :  { %855 = vrot.lane.b32.xlu1 %v1423_v15, %s1588_s12 }
0x1041   :  { %v856_v16 = vpop.permute.xlu1 %855 }
0x1042   :  { %v858_v17 = vmul.f32 %v1421_v1, %v856_v16 }
0x1044   :  { %860 = vrot.lane.b32.xlu0 %v858_v17, %s1589_s13 }
0x10b6   :  { %v861_v18 = vpop.permute.xlu0 %860 }
0x10b7   :  { %864 = vst.msk [vmem:[#allocation11 + $0x28] sm:$0xff] %vm67_vm1, %v861_v18  ;;  %1297 = vmatmul.mubr.msk.f32.vlgmr.msra.gmra.mrb[12].mxu0 %vm67_vm1, %v861_v18 }
0x118a   :  { %v935_v20 = vpop.f32.mrb[12].mxu0 }
0x118b   :  { %v939_v21 = vadd.f32 %v935_v20, %v209_v19  ;;  %v1298_v22 = vpop.f32.mrb[13].mxu0 }
0x118d   :  { %1424 = vtanh.f32 %v939_v21  ;;  %v1153_v24 = vmul.f32 -1.442695, %v939_v21 }
0x118f   :  { %1426 = vpow2.f32 %v1153_v24 }
0x1197   :  { %v1425_v23 = vpop.eup %1424 }
0x1198   :  { %949 = vrot.lane.b32.xlu1 %v1425_v23, %s1588_s12 }
0x1199   :  { %v1427_v25 = vpop.eup %1426 }
0x119a   :  { %v943_v26 = vadd.f32 1.0, %v1427_v25 }
0x119c   :  { %1428 = vrcp.f32 %v943_v26 }
0x11a6   :  { %v1429_v27 = vpop.eup %1428 }
0x11a7   :  { %v947_v30 = vmul.f32 %v1429_v27, %v852_v62 }
0x120a   :  { %v950_v28 = vpop.permute.xlu1 %949 }
0x120b   :  { %v952_v29 = vmul.f32 %v1429_v27, %v950_v28 }
0x120d   :  { %954 = vrot.lane.b32.xlu0 %v952_v29, %s1589_s13 }
0x127f   :  { %v955_v31 = vpop.permute.xlu0 %954 }
0x1280   :  { %v957_v3 = vadd.f32 %v955_v31, %v947_v30 }
0x1282   :  { %1430 = vtanh.f32 %v957_v3 }
0x128c   :  { %v1431_v32 = vpop.eup %1430 }
0x128d   :  { %960 = vrot.lane.b32.xlu1 %v1431_v32, %s1588_s12 }
0x12ff   :  { %v961_v33 = vpop.permute.xlu1 %960 }
0x1300   :  { %v963_v34 = vmul.f32 %v1429_v27, %v961_v33 }
0x1302   :  { %965 = vrot.lane.b32.xlu0 %v963_v34, %s1589_s13 }
0x1374   :  { %v966_v35 = vpop.permute.xlu0 %965 }
0x1375   :  { %969 = vst.msk [vmem:[#allocation11 + $0x30] sm:$0xff] %vm67_vm1, %v966_v35  ;;  %1308 = vmatmul.mubr.msk.f32.vlgmr.msra.gmra.mrb[8].mxu1 %vm67_vm1, %v966_v35 }
0x1448   :  { %v1040_v37 = vpop.f32.mrb[8].mxu1 }
0x1449   :  { %v1044_v38 = vadd.f32 %v1040_v37, %v214_v36  ;;  %v1309_v39 = vpop.f32.mrb[9].mxu1 }
0x144b   :  { %1432 = vtanh.f32 %v1044_v38  ;;  %v1155_v41 = vmul.f32 -1.442695, %v1044_v38 }
0x144d   :  { %1434 = vpow2.f32 %v1155_v41 }
0x1455   :  { %v1433_v40 = vpop.eup %1432 }
0x1456   :  { %1054 = vrot.lane.b32.xlu1 %v1433_v40, %s1588_s12 }
0x1457   :  { %v1435_v42 = vpop.eup %1434 }
0x1458   :  { %v1048_v43 = vadd.f32 1.0, %v1435_v42 }
0x145a   :  { %1436 = vrcp.f32 %v1048_v43 }
0x1464   :  { %v1437_v44 = vpop.eup %1436 }
0x1465   :  { %v1052_v47 = vmul.f32 %v1437_v44, %v957_v3 }
0x14c8   :  { %v1055_v45 = vpop.permute.xlu1 %1054 }
0x14c9   :  { %v1057_v46 = vmul.f32 %v1437_v44, %v1055_v45 }
0x14cb   :  { %1059 = vrot.lane.b32.xlu0 %v1057_v46, %s1589_s13 }
0x153d   :  { %v1060_v48 = vpop.permute.xlu0 %1059 }
0x153e   :  { %v1062_v14 = vadd.f32 %v1060_v48, %v1052_v47 }
0x1540   :  { %1438 = vtanh.f32 %v1062_v14 }
0x154a   :  { %v1439_v2 = vpop.eup %1438 }
0x154b   :  { %1065 = vrot.lane.b32.xlu1 %v1439_v2, %s1588_s12 }
0x154f   :  { %1077 = vrot.lane.b32.xlu1 %v1062_v14, %s1590_s3 }
0x15bd   :  { %v1066_v49 = vpop.permute.xlu1 %1065 }
0x15be   :  { %v1068_v50 = vmul.f32 %v1437_v44, %v1066_v49 }
0x15c0   :  { %1070 = vrot.lane.b32.xlu0 %v1068_v50, %s1589_s13 }
0x15c1   :  { %v1078_v51 = vpop.permute.xlu1 %1077 }
0x15c2   :  { %1080 = vst.msk [vmem:[#allocation4] sm:$0xff] %vm67_vm1, %v1078_v51  ;;  %1085 = vst.msk [vmem:[#allocation14] sm:$0xff] %vm67_vm1, %v1078_v51 }
0x1632   :  { %v1071_v52 = vpop.permute.xlu0 %1070 }
0x1633   :  { %1074 = vst.msk [vmem:[#allocation11 + $0x38] sm:$0xff] %vm67_vm1, %v1071_v52  ;;  %1075 = vst.msk [vmem:[#allocation3] sm:$0xff] %vm67_vm1, %v1071_v52 }
0x1634   :  { %1084 = vst.msk [vmem:[#allocation12] sm:$0xff] %vm67_vm1, %v1071_v52 }
0x1635   :  { %1517 = shalt.err (!%p1514_p0)
}
0x1636   :  { %s1518_s22 = scalar_lea.hbm %s1881_s5, 128 }
0x1637   :  { %p1519_p1 = scmp.ne.s32.totalorder %s1881_s5, %s1518_s22  ;;  %p1522_p2 = scmp.lt.u32.totalorder %s1518_s22, %s1881_s5 }
0x1639   :  { %p1524_p3 = pnand %p1522_p2, %p1519_p1 }
0x163b   :  { %1527 = shalt.err (!%p1524_p3)
}
0x163c   :  { %1107 = dma.vmem_to_hbm [thread:$0]  %s1105_s15, 128, %s1881_s5, [#allocation13]  }
0x163d   :  { %s1528_s30 = scalar_lea.vmem %s1820_s17, 1024  ;;  %p1533_p5 = scmp.lt.s32.totalorder %s1820_s17, %s1820_s17 }
0x163e   :  { %p1529_p4 = scmp.ne.s32.totalorder %s1820_s17, %s1528_s30  ;;  %p1534_p6 = scmp.lt.s32.totalorder %s1528_s30, %s1528_s30 }
0x1640   :  { %p1535_p7 = por %p1534_p6, %p1533_p5 }
0x1642   :  { %p1536_p8 = pnand %p1535_p7, %p1529_p4 }
0x1644   :  { %1539 = shalt.err (!%p1536_p8)
}
0x1645   :  { %s1540_s0 = scalar_lea.hbm %s1880_s4, 1024 }
0x1646   :  { %p1541_p9 = scmp.ne.s32.totalorder %s1880_s4, %s1540_s0  ;;  %p1544_p10 = scmp.lt.u32.totalorder %s1540_s0, %s1880_s4 }
0x1648   :  { %p1546_p11 = pnand %p1544_p10, %p1541_p9 }
0x164a   :  { %1549 = shalt.err (!%p1546_p11)
}
0x164b   :  { %1097 = dma.vmem_to_hbm [thread:$0]  %s1820_s17, 1024, %s1880_s4, [#allocation7], %s1582_s9, %s1582_s9, %s1583_s10  }
0x164c   :  { %s1550_s3 = scalar_lea.vmem %s1825_s19, 128  ;;  %p1555_p13 = scmp.lt.s32.totalorder %s1825_s19, %s1825_s19 }
0x164d   :  { %p1551_p12 = scmp.ne.s32.totalorder %s1825_s19, %s1550_s3  ;;  %p1556_p0 = scmp.lt.s32.totalorder %s1550_s3, %s1550_s3 }
0x164f   :  { %p1557_p1 = por %p1556_p0, %p1555_p13 }
0x1651   :  { %p1558_p2 = pnand %p1557_p1, %p1551_p12 }
0x1653   :  { %1561 = shalt.err (!%p1558_p2)
}
0x1654   :  { %s1562_s16 = scalar_lea.hbm %s1882_s6, 128 }
0x1655   :  { %p1563_p3 = scmp.ne.s32.totalorder %s1882_s6, %s1562_s16  ;;  %p1566_p4 = scmp.lt.u32.totalorder %s1562_s16, %s1882_s6 }
0x1657   :  { %p1568_p5 = pnand %p1566_p4, %p1563_p3 }
0x1659   :  { %1571 = shalt.err (!%p1568_p5)
}
0x165a   :  { %1117 = dma.vmem_to_hbm [thread:$0]  %s1825_s19, 128, %s1882_s6, [#allocation13]  }
0x165b   :  { %1576 = dma.done.wait [#allocation7], 1024  }
0x165c   :  { %1577 = vsyncadd [#allocation7], 4294966272 }
0x165d   :  { %1578 = dma.done.wait [#allocation13], 256  }
0x165e   :  { %1579 = vsyncadd [#allocation13], 4294967040 }
0x165f   :  { %1127 = vsyncpa [#allocation6], 1 }
0x1660   :  { %1128 = vsyncpa [#allocation9], 1 }
0x1661   :  { %1129 = vsyncpa [#allocation7], 1 }
0x1662   :  { %1130 = vsyncpa [#allocation13], 1 }

</bundles_post_ra>
